<compile_context>
chip_gen: v5e
topology: v5e:2x2
jax: 0.10.0
libtpu: 0.0.40
codegen_flags: <defaults>
</compile_context>

<pallas_src>
import functools

import jax
import jax.numpy as jnp
from jax.experimental import pallas as pl
from jax.experimental.pallas import tpu as pltpu


def _attention_kernel(g_ref, x_ref, wg_ref, wx_ref, b_ref, wpsi_ref, bpsi_ref,
                      out_ref, *, psi_on_mxu):
    # g_ref: (F_g, TM) bf16, x_ref: (F_l, TM) bf16 — pixels in the lane dim.
    # wg_ref: (F_int, F_g) bf16, wx_ref: (F_int, F_l) bf16,
    # b_ref: (F_int, 1) f32 (bg + bx folded), wpsi_ref: (1, F_int) or
    # (F_int, 1) f32 depending on psi path, bpsi_ref: (1,) f32 in SMEM.
    x = x_ref[...]
    # Fused branch: single f32 accumulator, one bias add, one ReLU.
    a = jnp.dot(wg_ref[...], g_ref[...], preferred_element_type=jnp.float32)
    a = a + jnp.dot(wx_ref[...], x, preferred_element_type=jnp.float32)
    a = jnp.maximum(a + b_ref[...], 0.0)                     # (F_int, TM)
    if psi_on_mxu:
        # (1, F_int) @ (F_int, TM) on the (otherwise idle) MXU.
        p = jnp.dot(wpsi_ref[...], a, preferred_element_type=jnp.float32)
    else:
        # Small F_int: VPU broadcast-mul + sublane reduce.
        p = jnp.sum(a * wpsi_ref[...], axis=0, keepdims=True)
    psi = jax.nn.sigmoid(p + bpsi_ref[0])                    # (1, TM)
    out_ref[...] = (x.astype(jnp.float32) * psi).astype(out_ref.dtype)


def _fold_bn(conv_w, conv_b, gamma, beta, mean, var, eps=1e-5):
    """Fold eval-mode BatchNorm into a 1x1 conv. conv_w: (C_out, C_in)."""
    scale = gamma / jnp.sqrt(var + eps)                      # (C_out,)
    w = conv_w * scale[:, None]
    b = (conv_b - mean) * scale + beta
    return w, b


def _round_up(v, m):
    return ((v + m - 1) // m) * m


@functools.partial(jax.jit, static_argnames=("tile_m",))
def attention_block(g, x, params, tile_m=4096):
    """g: (N, F_g, H, W), x: (N, F_l, H, W) float32.  Returns x * psi (NCHW)."""
    N, F_g, H, W = g.shape
    _, F_l, _, _ = x.shape

    wg, bg = _fold_bn(params["wg"], params["bg"], params["bn_g_gamma"],
                      params["bn_g_beta"], params["bn_g_mean"], params["bn_g_var"])
    wx, bx = _fold_bn(params["wx"], params["bx"], params["bn_x_gamma"],
                      params["bn_x_beta"], params["bn_x_mean"], params["bn_x_var"])
    wpsi, bpsi = _fold_bn(params["wpsi"], params["bpsi"], params["bn_p_gamma"],
                          params["bn_p_beta"], params["bn_p_mean"], params["bn_p_var"])

    F_int = wg.shape[0]
    hw = H * W

    # bf16 HBM transport for activations + matmul weights (f32 accumulate).
    in_dt = jnp.bfloat16
    in_b, out_b = 2, jnp.dtype(x.dtype).itemsize
    g3 = g.reshape(N, F_g, hw).astype(in_dt)     # free reshape, cheap cast
    x3 = x.reshape(N, F_l, hw).astype(in_dt)
    wg_c = wg.astype(in_dt)
    wx_c = wx.astype(in_dt)
    b_sum = (bg + bx).reshape(F_int, 1).astype(jnp.float32)

    # psi path: MXU when F_int is large enough to matter, VPU otherwise.
    psi_on_mxu = F_int >= 64
    wpsi_arg = wpsi.astype(jnp.float32)                       # (1, F_int)
    if not psi_on_mxu:
        wpsi_arg = wpsi_arg.T                                  # (F_int, 1)
    bpsi_arg = bpsi.reshape(1).astype(jnp.float32)             # scalar via SMEM

    # ---- generation-aware tile sizing ------------------------------------
    vmem_cap = 64 << 20                                        # conservative (v7x)
    try:
        info = pltpu.get_tpu_info()
        vmem_cap = int(getattr(info, "vmem_capacity_bytes", vmem_cap))
    except Exception:
        pass
    vmem_limit = max(32 << 20, min((vmem_cap * 3) // 4, 100 << 20))
    budget = int(vmem_limit * 0.6)
    # Per lane column: double-buffered g/x inputs + output, plus live f32
    # intermediates (a, x_f32, psi) and slack.
    bytes_per_col = (2 * (F_g * in_b + F_l * in_b + F_l * out_b)
                     + (F_int + F_l + 2) * 4)
    tm_budget = max(128, (budget // bytes_per_col) // 128 * 128)

    tm = min(int(tile_m), _round_up(hw, 128), tm_budget)
    tm = max(128, tm // 128 * 128)
    # Expose >= 2 grid steps for megacore (v7x has 2 TensorCores).
    if N == 1 and hw > 128:
        tm = min(tm, max(128, _round_up((hw + 1) // 2, 128)))

    grid = (N, pl.cdiv(hw, tm))        # no explicit pad: Pallas clips the tail

    kernel = functools.partial(_attention_kernel, psi_on_mxu=psi_on_mxu)

    out = pl.pallas_call(
        kernel,
        out_shape=jax.ShapeDtypeStruct((N, F_l, hw), x.dtype),
        grid_spec=pltpu.PrefetchScalarGridSpec(
            num_scalar_prefetch=0,
            grid=grid,
            in_specs=[
                pl.BlockSpec((pl.Squeezed(), F_g, tm), lambda n, t: (n, 0, t)),
                pl.BlockSpec((pl.Squeezed(), F_l, tm), lambda n, t: (n, 0, t)),
                pl.BlockSpec((F_int, F_g), lambda n, t: (0, 0)),      # Wg (bf16)
                pl.BlockSpec((F_int, F_l), lambda n, t: (0, 0)),      # Wx (bf16)
                pl.BlockSpec((F_int, 1), lambda n, t: (0, 0)),        # bg + bx
                pl.BlockSpec(wpsi_arg.shape, lambda n, t: (0, 0)),    # Wpsi
                pl.BlockSpec(memory_space=pltpu.MemorySpace.SMEM),    # bpsi scalar
            ],
            out_specs=pl.BlockSpec((pl.Squeezed(), F_l, tm),
                                   lambda n, t: (n, 0, t)),
        ),
        compiler_params=pltpu.CompilerParams(
            dimension_semantics=("parallel", "parallel"),
            vmem_limit_bytes=int(vmem_limit)),
    )(g3, x3, wg_c, wx_c, b_sum, wpsi_arg, bpsi_arg)

    return out.reshape(N, F_l, H, W)


def init_params(key, F_g, F_l, F_int):
    ks = jax.random.split(key, 6)
    params = {
        # conv weights stored PyTorch-style (C_out, C_in)
        "wg": jax.random.normal(ks[0], (F_int, F_g), jnp.float32) * 0.1,
        "bg": jax.random.normal(ks[1], (F_int,), jnp.float32) * 0.1,
        "wx": jax.random.normal(ks[2], (F_int, F_l), jnp.float32) * 0.1,
        "bx": jax.random.normal(ks[3], (F_int,), jnp.float32) * 0.1,
        "wpsi": jax.random.normal(ks[4], (1, F_int), jnp.float32) * 0.1,
        "bpsi": jax.random.normal(ks[5], (1,), jnp.float32) * 0.1,
        # BatchNorm params (eval-mode running stats)
        "bn_g_gamma": jnp.full((F_int,), 1.1, jnp.float32),
        "bn_g_beta": jnp.full((F_int,), 0.05, jnp.float32),
        "bn_g_mean": jnp.full((F_int,), 0.02, jnp.float32),
        "bn_g_var": jnp.full((F_int,), 0.9, jnp.float32),
        "bn_x_gamma": jnp.full((F_int,), 0.95, jnp.float32),
        "bn_x_beta": jnp.full((F_int,), -0.05, jnp.float32),
        "bn_x_mean": jnp.full((F_int,), -0.01, jnp.float32),
        "bn_x_var": jnp.full((F_int,), 1.1, jnp.float32),
        "bn_p_gamma": jnp.full((1,), 1.05, jnp.float32),
        "bn_p_beta": jnp.full((1,), 0.01, jnp.float32),
        "bn_p_mean": jnp.full((1,), 0.0, jnp.float32),
        "bn_p_var": jnp.full((1,), 1.0, jnp.float32),
    }
    return params


def _reference(g, x, params, eps=1e-5):
    """Pure-JAX reference (eval-mode BN), full f32, for correctness check."""
    def branch(inp, w, b, gamma, beta, mean, var):
        y = jnp.einsum("nchw,dc->ndhw", inp, w) + b[None, :, None, None]
        return (gamma[None, :, None, None]
                * (y - mean[None, :, None, None])
                / jnp.sqrt(var[None, :, None, None] + eps)
                + beta[None, :, None, None])

    g1 = branch(g, params["wg"], params["bg"], params["bn_g_gamma"],
                params["bn_g_beta"], params["bn_g_mean"], params["bn_g_var"])
    x1 = branch(x, params["wx"], params["bx"], params["bn_x_gamma"],
                params["bn_x_beta"], params["bn_x_mean"], params["bn_x_var"])
    a = jnp.maximum(g1 + x1, 0.0)
    p = branch(a, params["wpsi"], params["bpsi"], params["bn_p_gamma"],
               params["bn_p_beta"], params["bn_p_mean"], params["bn_p_var"])
    psi = jax.nn.sigmoid(p)
    return x * psi


if __name__ == "__main__":
    key = jax.random.PRNGKey(0)
    k1, k2, k3 = jax.random.split(key, 3)

    N, F_g, F_l, F_int, H, W = 2, 8, 8, 16, 16, 16
    g = jax.random.normal(k1, (N, F_g, H, W), jnp.float32)
    x = jax.random.normal(k2, (N, F_l, H, W), jnp.float32)
    params = init_params(k3, F_g, F_l, F_int)

    out = attention_block(g, x, params)
    out = jax.block_until_ready(out)

    ref = _reference(g, x, params)
    assert out.shape == (N, F_l, H, W)
    # bf16 activation/weight transport -> loosened tolerance vs f32 reference.
    assert jnp.allclose(out, ref, atol=3e-2, rtol=3e-2), "mismatch vs reference"
    print("KERNEL_OK")
</pallas_src>

<mosaic_0001>
module attributes {stable_mosaic.version = 11 : i64} {
  func.func @_attention_kernel(%arg0: i32, %arg1: i32, %arg2: memref<1x8x256xbf16, #tpu.memory_space<vmem>>, %arg3: memref<1x8x256xbf16, #tpu.memory_space<vmem>>, %arg4: memref<16x8xbf16, #tpu.memory_space<vmem>>, %arg5: memref<16x8xbf16, #tpu.memory_space<vmem>>, %arg6: memref<16x1xf32, #tpu.memory_space<vmem>>, %arg7: memref<16x1xf32, #tpu.memory_space<vmem>>, %arg8: memref<1xf32, #tpu.memory_space<smem>>, %arg9: memref<1x8x256xf32, #tpu.memory_space<vmem>>) attributes {dimension_semantics = [#tpu.dimension_semantics<parallel>, #tpu.dimension_semantics<parallel>], iteration_bounds = array<i64: 2, 1>, scalar_prefetch = 0 : i64, scratch_operands = 0 : i64, tpu.core_type = #tpu.core_type<tc>, window_params = [{transform_indices = @transform_0, window_bounds = array<i64: 1, 8, 256>}, {transform_indices = @transform_1, window_bounds = array<i64: 1, 8, 256>}, {pipeline_mode = #tpu.pipeline_mode<synchronous>, transform_indices = @transform_2, window_bounds = array<i64: 16, 8>}, {pipeline_mode = #tpu.pipeline_mode<synchronous>, transform_indices = @transform_3, window_bounds = array<i64: 16, 8>}, {pipeline_mode = #tpu.pipeline_mode<synchronous>, transform_indices = @transform_4, window_bounds = array<i64: 16, 1>}, {pipeline_mode = #tpu.pipeline_mode<synchronous>, transform_indices = @transform_5, window_bounds = array<i64: 16, 1>}, {transform_indices = @transform_6, window_bounds = array<i64: 1>}, {transform_indices = @transform_7, window_bounds = array<i64: 1, 8, 256>}]} {
    %c0 = arith.constant 0 : index
    %c0_0 = arith.constant 0 : index
    %c0_1 = arith.constant 0 : index
    %0 = vector.load %arg3[%c0, %c0_0, %c0_1] : memref<1x8x256xbf16, #tpu.memory_space<vmem>>, vector<1x8x256xbf16>
    %1 = vector.shape_cast %0 : vector<1x8x256xbf16> to vector<8x256xbf16>
    %c0_2 = arith.constant 0 : index
    %c0_3 = arith.constant 0 : index
    %2 = vector.load %arg4[%c0_2, %c0_3] : memref<16x8xbf16, #tpu.memory_space<vmem>>, vector<16x8xbf16>
    %c0_4 = arith.constant 0 : index
    %c0_5 = arith.constant 0 : index
    %c0_6 = arith.constant 0 : index
    %3 = vector.load %arg2[%c0_4, %c0_5, %c0_6] : memref<1x8x256xbf16, #tpu.memory_space<vmem>>, vector<1x8x256xbf16>
    %4 = vector.shape_cast %3 : vector<1x8x256xbf16> to vector<8x256xbf16>
    %cst = arith.constant dense<0.000000e+00> : vector<16x256xf32>
    %5 = tpu.matmul %2, %4, %cst {dimension_numbers = #tpu.dot_dimension_numbers<[1], [0], [0], [1], [0, 0, 1, 1], [], []>} : vector<16x8xbf16>, vector<8x256xbf16>, vector<16x256xf32> -> vector<16x256xf32>
    %c0_7 = arith.constant 0 : index
    %c0_8 = arith.constant 0 : index
    %6 = vector.load %arg5[%c0_7, %c0_8] : memref<16x8xbf16, #tpu.memory_space<vmem>>, vector<16x8xbf16>
    %cst_9 = arith.constant dense<0.000000e+00> : vector<16x256xf32>
    %7 = tpu.matmul %6, %1, %cst_9 {dimension_numbers = #tpu.dot_dimension_numbers<[1], [0], [0], [1], [0, 0, 1, 1], [], []>} : vector<16x8xbf16>, vector<8x256xbf16>, vector<16x256xf32> -> vector<16x256xf32>
    %8 = arith.addf %5, %7 : vector<16x256xf32>
    %c0_10 = arith.constant 0 : index
    %c0_11 = arith.constant 0 : index
    %9 = vector.load %arg6[%c0_10, %c0_11] : memref<16x1xf32, #tpu.memory_space<vmem>>, vector<16x1xf32>
    %10 = vector.broadcast %9 : vector<16x1xf32> to vector<16x256xf32>
    %11 = arith.addf %8, %10 : vector<16x256xf32>
    %cst_12 = arith.constant 0.000000e+00 : f32
    %12 = vector.broadcast %cst_12 : f32 to vector<16x256xf32>
    %13 = arith.maximumf %11, %12 : vector<16x256xf32>
    %c0_13 = arith.constant 0 : index
    %c0_14 = arith.constant 0 : index
    %14 = vector.load %arg7[%c0_13, %c0_14] : memref<16x1xf32, #tpu.memory_space<vmem>>, vector<16x1xf32>
    %15 = vector.broadcast %14 : vector<16x1xf32> to vector<16x256xf32>
    %16 = arith.mulf %13, %15 : vector<16x256xf32>
    %cst_15 = arith.constant dense<0.000000e+00> : vector<256xf32>
    %17 = vector.multi_reduction <add>, %16, %cst_15 [0] : vector<16x256xf32> to vector<256xf32>
    %18 = vector.shape_cast %17 : vector<256xf32> to vector<1x256xf32>
    %c0_16 = arith.constant 0 : index
    %19 = memref.load %arg8[%c0_16] : memref<1xf32, #tpu.memory_space<smem>>
    %20 = vector.broadcast %19 : f32 to vector<1x256xf32>
    %21 = arith.addf %18, %20 : vector<1x256xf32>
    %22 = arith.negf %21 : vector<1x256xf32>
    %23 = math.exp %22 : vector<1x256xf32>
    %cst_17 = arith.constant 1.000000e+00 : f32
    %24 = vector.broadcast %cst_17 : f32 to vector<1x256xf32>
    %25 = arith.addf %24, %23 : vector<1x256xf32>
    %26 = arith.divf %24, %25 : vector<1x256xf32>
    %27 = arith.extf %1 : vector<8x256xbf16> to vector<8x256xf32>
    %28 = vector.broadcast %26 : vector<1x256xf32> to vector<8x256xf32>
    %29 = arith.mulf %27, %28 : vector<8x256xf32>
    %c0_18 = arith.constant 0 : index
    %c0_19 = arith.constant 0 : index
    %c0_20 = arith.constant 0 : index
    %30 = vector.load %arg9[%c0_18, %c0_19, %c0_20] : memref<1x8x256xf32, #tpu.memory_space<vmem>>, vector<1x8x256xf32>
    %31 = vector.shape_cast %30 : vector<1x8x256xf32> to vector<8x256xf32>
    %32 = vector.shape_cast %29 : vector<8x256xf32> to vector<1x8x256xf32>
    tpu.vector_store %arg9[%c0_18, %c0_19, %c0_20], %32 {strides = array<i32>} : memref<1x8x256xf32, #tpu.memory_space<vmem>>, vector<1x8x256xf32>,
    return
  }
  func.func @transform_0(%arg0: i32, %arg1: i32) -> (i32, i32, i32) {
    %c0_i32 = arith.constant 0 : i32
    %c0_i32_0 = arith.constant 0 : i32
    return %arg0, %c0_i32, %arg1 : i32, i32, i32
  }
  func.func @transform_1(%arg0: i32, %arg1: i32) -> (i32, i32, i32) {
    %c0_i32 = arith.constant 0 : i32
    %c0_i32_0 = arith.constant 0 : i32
    return %arg0, %c0_i32, %arg1 : i32, i32, i32
  }
  func.func @transform_2(%arg0: i32, %arg1: i32) -> (i32, i32) {
    %c0_i32 = arith.constant 0 : i32
    %c0_i32_0 = arith.constant 0 : i32
    %c0_i32_1 = arith.constant 0 : i32
    return %c0_i32, %c0_i32_0 : i32, i32
  }
  func.func @transform_3(%arg0: i32, %arg1: i32) -> (i32, i32) {
    %c0_i32 = arith.constant 0 : i32
    %c0_i32_0 = arith.constant 0 : i32
    %c0_i32_1 = arith.constant 0 : i32
    return %c0_i32, %c0_i32_0 : i32, i32
  }
  func.func @transform_4(%arg0: i32, %arg1: i32) -> (i32, i32) {
    %c0_i32 = arith.constant 0 : i32
    %c0_i32_0 = arith.constant 0 : i32
    %c0_i32_1 = arith.constant 0 : i32
    return %c0_i32, %c0_i32_0 : i32, i32
  }
  func.func @transform_5(%arg0: i32, %arg1: i32) -> (i32, i32) {
    %c0_i32 = arith.constant 0 : i32
    %c0_i32_0 = arith.constant 0 : i32
    %c0_i32_1 = arith.constant 0 : i32
    return %c0_i32, %c0_i32_0 : i32, i32
  }
  func.func @transform_6(%arg0: i32, %arg1: i32) -> i32 {
    %c0_i32 = arith.constant 0 : i32
    %c0_i32_0 = arith.constant 0 : i32
    return %c0_i32 : i32
  }
  func.func @transform_7(%arg0: i32, %arg1: i32) -> (i32, i32, i32) {
    %c0_i32 = arith.constant 0 : i32
    %c0_i32_0 = arith.constant 0 : i32
    return %arg0, %c0_i32, %arg1 : i32, i32, i32
  }
}

</mosaic_0001>

<bundles_post_ra>
// kernel: attention_block.1
= control target key start
LH: loop header
LB: loop body
LE: loop exit
PB: predicated region body
PF: predicated region fallthrough
CT: control target
= control target key end

     0   :  { %s796_s26 = smov 0   ;;  %s798_s27 = smov 0   ;;  %s860_s0 = inlined_call_operand.vmem [shape: bf16[2,8,256], index: 0, kind: input, shape index: {}]   ;;  %s861_s1 = inlined_call_operand.vmem [shape: bf16[2,8,256], index: 1, kind: input, shape index: {}]   ;;  %s862_s2 = inlined_call_operand.vmem [shape: bf16[16,8], index: 2, kind: input, shape index: {}]   ;;  %s863_s3 = inlined_call_operand.vmem [shape: bf16[16,8], index: 3, kind: input, shape index: {}]   ;;  %s864_s4 = inlined_call_operand.vmem [shape: f32[16,1], index: 4, kind: input, shape index: {}]   ;;  %s865_s5 = inlined_call_operand.vmem [shape: f32[16,1], index: 5, kind: input, shape index: {}]   ;;  %s866_s6 = inlined_call_operand.<no memory space> [shape: f32[1], index: 6, kind: input, shape index: {}]   ;;  %s867_s7 = inlined_call_operand.vmem [shape: f32[2,8,256], index: 7, kind: output, shape index: {}]  }
   0x1   :  { %12 = sst [smem:[#allocation2]] %s866_s6  ;;  %s800_s28 = smov 0  }
   0x2 LB: > { %s30_s6 = sadd.s32 1, %s746_s27  ;;  %p665_p0 = scmp.ge.s32.totalorder %s750_s28, 1  ;;  %s750_s28 = sphi %s800_s28, %s18_s28   ;;  %s746_s27 = sphi %s798_s27, %s869_s27   ;;  %s742_s26 = sphi %s796_s26, %s868_s26  }
   0x3   : > { %p32_p1 = scmp.ge.s32.totalorder %s30_s6, 2  ;;  %p276_p2 = scmp.lt.s32.totalorder %s750_s28, 3 }
   0x5   : > { %s871_s6 = smov (%p32_p1, %s30_s6), 0  ;;  %p277_p3 = pnand %p665_p0, %p276_p2 }
   0x6   : > { %p326_p4 = scmp.lt.s32.totalorder (!%p277_p3), %s742_s26, 1  ;;  %s508_s25 = sld [smem:[#allocation2]] (!%p277_p3) }
   0x7   : > { %280 = sbr.rel (%p277_p3) target bundleno = 222 (0xde), region = 48 }
   0xc   : > { %v752_v0 = vmov 0   ;;  %v458_v1 = vld [vmem:[%s864_s4] sm:$0xff]  ;;  %s873_s26 = smov (!%p326_p4, %s742_s26), 1  ;;  %v459_v7 = vld [vmem:[%s864_s4 + $0x8] sm:$0xff]  ;;  %vm376_vm0 = vcmask 1043456   ;;  %vm372_vm1 = vcmask 64512   ;;  %v509_v61 = vstv %s508_s25 }
   0xd   : > { %718 = vset.pattern.permute.xlu0 %v752_v0  ;;  %719 = vset.pattern.permute.xlu1 %v752_v0  ;;  %v478_v2 = vld [vmem:[%s865_s5] sm:$0xff]  ;;  %s688_s10 = sshll.u32 %s873_s26, 3  ;;  %v479_v8 = vld [vmem:[%s865_s5 + $0x8] sm:$0xff]  ;;  %s690_s29 = sshll.u32 %s873_s26, 4 }
   0xe   : > { %462 = vperm.xlu0 %718, %v458_v1   ;;  %482 = vperm.xlu1 %719, %v478_v2   ;;  %s343_s13 = scalar_lea.vmem %s861_s1, %s688_s10  ;;  %s333_s16 = scalar_lea.vmem %s860_s0, %s688_s10  ;;  %v692_v17 = vld [vmem:[%s863_s3] sm:$0xff] }
   0xf   : > { %v826_v3 = vld [vmem:[%s343_s13] sm:$0xff]  ;;  %s353_s9 = scalar_lea.vmem %s867_s7, %s690_s29 }
  0x10   : > { %v368_v4 = vunpack.c.l.b16 %v826_v3  ;;  %v369_v5 = vunpack.c.h.b16 %v826_v3  ;;  %v359_v6 = vld [vmem:[%s333_s16] sm:$0xff] }
  0x11   : > { %v417_v9 = vunpack.c.l.b16 %v359_v6  ;;  %v418_v10 = vunpack.c.h.b16 %v359_v6  ;;  %v691_v20 = vld [vmem:[%s862_s2] sm:$0xff] }
  0x12   : > { %v370_v11 = vpack.c.b16 %v368_v4, %v368_v4  ;;  %v371_v12 = vpack.c.b16 %v369_v5, %v369_v5 }
  0x13   : > { %v419_v13 = vpack.c.b16 %v417_v9, %v417_v9  ;;  %v420_v14 = vpack.c.b16 %v418_v10, %v418_v10 }
  0x14   : > { %v378_v15 = vsel %vm376_vm0, %v370_v11, 0  ;;  %v381_v16 = vsel %vm376_vm0, %v371_v12, 0 }
  0x15   : > { %390 = vmatpush.bf16.msra.mxu0 %v378_v15  ;;  %404 = vmatpush.bf16.msra.mxu1 %v381_v16  ;;  %v425_v18 = vsel %vm376_vm0, %v419_v13, 0  ;;  %v428_v19 = vsel %vm376_vm0, %v420_v14, 0 }
  0x16   : > { %467 = vperm.xlu0 %718, %v459_v7   ;;  %487 = vperm.xlu1 %719, %v479_v8  }
  0x17   : > { %437 = vmatpush.bf16.msra.mxu2 %v425_v18  ;;  %451 = vmatpush.bf16.msra.mxu3 %v428_v19 }
  0x18   : > { %676 = vmatmul.msk.bf16.vlgmr.msra.gmra.mxu0 %vm372_vm1, %v692_v17  ;;  %677 = vmatmul.msk.bf16.vlgmr.msra.gmra.mxu1 %vm372_vm1, %v692_v17 }
  0x1a   : > { %682 = vmatmul.msk.bf16.vlgmr.msra.gmra.mxu2 %vm372_vm1, %v691_v20  ;;  %683 = vmatmul.msk.bf16.vlgmr.msra.gmra.mxu3 %vm372_vm1, %v691_v20 }
  0x80   : > { %v463_v23 = vpop.permute.xlu0 %462  ;;  %v483_v28 = vpop.permute.xlu1 %482 }
  0x88   : > { %v468_v37 = vpop.permute.xlu0 %467  ;;  %v488_v44 = vpop.permute.xlu1 %487 }
  0x95   : > { %v392_v21 = vpop.f32.mrf.mxu0  ;;  %v406_v22 = vpop.f32.mrf.mxu1 }
  0x9d   : > { %v439_v24 = vpop.f32.mrf.mxu2  ;;  %v453_v25 = vpop.f32.mrf.mxu3 }
  0x9e   : > { %v440_v26 = vadd.f32 %v439_v24, %v392_v21  ;;  %v454_v27 = vadd.f32 %v453_v25, %v406_v22  ;;  %v394_v31 = vpop.f32.mrf.mxu0  ;;  %v408_v32 = vpop.f32.mrf.mxu1  ;;  %v550_v21 = vunpack.c.l.bf16 %v826_v3 }
  0xa0   : > { %v470_v29 = vadd.f32 %v463_v23, %v440_v26  ;;  %v471_v30 = vadd.f32 %v463_v23, %v454_v27  ;;  %v551_v23 = vunpack.c.h.bf16 %v826_v3 }
  0xa2   : > { %v474_v38 = vmax.f32 %v470_v29, 0.0  ;;  %v475_v39 = vmax.f32 %v471_v30, 0.0 }
  0xa4   : > { %v490_v45 = vmul.f32 %v483_v28, %v474_v38  ;;  %v491_v46 = vmul.f32 %v483_v28, %v475_v39 }
  0xa5   : > { %v441_v33 = vpop.f32.mrf.mxu2  ;;  %v455_v34 = vpop.f32.mrf.mxu3 }
  0xa6   : > { %v442_v35 = vadd.f32 %v441_v33, %v394_v31  ;;  %v456_v36 = vadd.f32 %v455_v34, %v408_v32 }
  0xa8   : > { %v472_v40 = vadd.f32 %v468_v37, %v442_v35  ;;  %v473_v41 = vadd.f32 %v468_v37, %v456_v36 }
  0xaa   : > { %v476_v42 = vmax.f32 %v472_v40, 0.0  ;;  %v477_v43 = vmax.f32 %v473_v41, 0.0 }
  0xac   : > { %v492_v47 = vmul.f32 %v488_v44, %v476_v42  ;;  %v493_v48 = vmul.f32 %v488_v44, %v477_v43 }
  0xae   : > { %v494_v49 = vadd.f32 %v492_v47, %v490_v45  ;;  %v501_v50 = vadd.f32 %v493_v48, %v491_v46 }
  0xb0   : > { %v495_v51 = vrot.slane %v494_v49, 4  ;;  %v502_v52 = vrot.slane %v501_v50, 4 }
  0xb2   : > { %v496_v53 = vadd.f32 %v495_v51, %v494_v49  ;;  %v503_v54 = vadd.f32 %v502_v52, %v501_v50 }
  0xb4   : > { %v497_v55 = vrot.slane %v496_v53, 2  ;;  %v504_v56 = vrot.slane %v503_v54, 2 }
  0xb6   : > { %v498_v57 = vadd.f32 %v497_v55, %v496_v53  ;;  %v505_v58 = vadd.f32 %v504_v56, %v503_v54 }
  0xb8   : > { %v499_v59 = vrot.slane %v498_v57, 1  ;;  %v506_v60 = vrot.slane %v505_v58, 1 }
  0xba   : > { %v500_v62 = vadd.f32 %v499_v59, %v498_v57  ;;  %v507_v63 = vadd.f32 %v506_v60, %v505_v58 }
  0xbc   : > { %v510_v0 = vadd.f32 %v509_v61, %v500_v62  ;;  %v511_v1 = vadd.f32 %v509_v61, %v507_v63 }
  0xbe   : > { %v684_v2 = vmul.f32 -1.442695, %v510_v0  ;;  %v685_v4 = vmul.f32 -1.442695, %v511_v1 }
  0xc0   : > { %720 = vpow2.f32 %v684_v2 }
  0xc1   : > { %722 = vpow2.f32 %v685_v4 }
  0xc6   : > { %v721_v5 = vpop.eup %720 }
  0xc7   : > { %v723_v6 = vpop.eup %722  ;;  %v518_v7 = vadd.f32 1.0, %v721_v5 }
  0xc8   : > { %v519_v8 = vadd.f32 1.0, %v723_v6 }
  0xc9   : > { %724 = vrcp.f32 %v518_v7  ;;  %v531_v14 = vand.u32 2147483648, %v518_v7  ;;  %v529_v17 = vand.u32 2147483647, %v518_v7  ;;  %vm525_vm4 = vweird.f32 %v518_v7 }
  0xca   : > { %726 = vrcp.f32 %v519_v8  ;;  %v546_v18 = vand.u32 2147483648, %v519_v8  ;;  %v544_v20 = vand.u32 2147483647, %v519_v8  ;;  %vm540_vm6 = vweird.f32 %v519_v8 }
  0xcb   : > { %v532_v24 = vor.u32 1.1754944e-38, %v531_v14  ;;  %vm530_vm7 = vcmp.eq.f32.partialorder %v529_v17, 8.507059e+37 }
  0xcc   : > { %v547_v27 = vor.u32 1.1754944e-38, %v546_v18  ;;  %vm545_vm9 = vcmp.eq.f32.partialorder %v544_v20, 8.507059e+37 }
  0xcf   : > { %v725_v9 = vpop.eup %724 }
  0xd0   : > { %v727_v10 = vpop.eup %726  ;;  %v521_v11 = vmul.f32 %v725_v9, %v518_v7  ;;  %vm526_vm2 = vweird.f32 %v725_v9 }
  0xd1   : > { %v536_v12 = vmul.f32 %v727_v10, %v519_v8  ;;  %vm541_vm3 = vweird.f32 %v727_v10  ;;  %vm527_vm5 = vmor %vm525_vm4, %vm526_vm2 }
  0xd2   : > { %v522_v13 = vsub.f32 1.0, %v521_v11  ;;  %vm542_vm8 = vmor %vm540_vm6, %vm541_vm3 }
  0xd3   : > { %v537_v15 = vsub.f32 1.0, %v536_v12 }
  0xd4   : > { %v523_v16 = vmul.f32 %v725_v9, %v522_v13 }
  0xd5   : > { %v538_v19 = vmul.f32 %v727_v10, %v537_v15 }
  0xd6   : > { %v524_v22 = vadd.f32 %v725_v9, %v523_v16 }
  0xd7   : > { %v539_v25 = vadd.f32 %v727_v10, %v538_v19 }
  0xd8   : > { %v528_v26 = vsel %vm527_vm5, %v725_v9, %v524_v22 }
  0xd9   : > { %v533_v28 = vsel %vm530_vm7, %v532_v24, %v528_v26  ;;  %v543_v29 = vsel %vm542_vm8, %v727_v10, %v539_v25 }
  0xda   : > { %v552_v30 = vmul.f32 %v550_v21, %v533_v28  ;;  %v548_v31 = vsel %vm545_vm9, %v547_v27, %v543_v29 }
  0xdb   : > { %v553_v32 = vmul.f32 %v551_v23, %v548_v31 }
  0xdc   : > { %554 = vst [vmem:[%s353_s9] sm:$0xff] %v552_v30 }
  0xdd   : > { %555 = vst [vmem:[%s353_s9 + $0x8] sm:$0xff] %v553_v32 }
  0xde PF: > { %s18_s28 = sadd.s32 1, %s750_s28   ;;  %s868_s26 = smov %s746_s27 }
  0xdf   : > { %p15_p5 = scmp.ge.s32.totalorder %s18_s28, 4   ;;  %s869_s27 = smov %s871_s6 }
  0xe1   :  { %17 = sbr.rel (!%p15_p5) target bundleno = 2 (0x2), region = 81 }

</bundles_post_ra>
